<compile_context>
chip_gen: v7x
topology: tpu7x:2x2x1
jax: 0.10.0
libtpu: 0.0.40
codegen_flags: <defaults>
</compile_context>

<pallas_src>
import functools
import math

import jax
import jax.numpy as jnp
from jax import lax
from jax.experimental import pallas as pl
from jax.experimental.pallas import tpu as pltpu


# ------------------------------ helpers ------------------------------------ #

def _gelu(v):
    # exact erf GELU (matches nn.GELU default), computed in f32
    return 0.5 * v * (1.0 + lax.erf(v * (1.0 / math.sqrt(2.0))))


def _layernorm(v, g, b, eps):
    mu = jnp.mean(v, axis=-1, keepdims=True)
    var = jnp.mean((v - mu) ** 2, axis=-1, keepdims=True)
    return (v - mu) * lax.rsqrt(var + eps) * g + b


def _round_up(n, m):
    return ((n + m - 1) // m) * m


def _largest_divisor(n, target):
    """Largest divisor of n that is <= target, preferring multiples of 8."""
    best = None
    for d in range(min(n, target), 0, -1):
        if n % d == 0:
            if d % 8 == 0 or d == n:
                return d
            if best is None:
                best = d
    return best or n


def _vmem_budget():
    """Return (vmem_limit_bytes or None, tile-sizing budget in bytes)."""
    try:
        cap = int(pltpu.get_tpu_info().vmem_capacity_bytes)
    except Exception:
        # Unknown hardware: keep the compiler's default scoped-VMEM limit and
        # size tiles modestly.
        return None, 24 * 1024 * 1024
    limit = min(cap * 4 // 5, 100 * 1024 * 1024)   # v5e/v6e ~100MiB, v7x ~51MiB
    return limit, limit * 7 // 10


def _mixer_tile_bytes(bt, sp, d, t, c):
    """Rough per-grid-step VMEM footprint of the fused mixer kernel."""
    f32, bf = 4, 2
    out_buf = 2 * bt * sp * d * f32                       # resident f32 output (+slack)
    act_tmp = bt * sp * d * (2 * f32 + bf)                # residual / LN temp / bf16 copy
    tok_w = 2 * bt * t * sp * bf                          # broadcast token weights
    tok_h = bt * t * d * (f32 + bf)                       # token-MLP hidden
    ch_h = bt * sp * c * (f32 + bf)                       # channel-MLP hidden
    weights = 2 * ((2 * t * sp + 2 * d * c) * bf          # double-buffered weights
                   + (4 * d + t + sp + c) * f32)
    return out_buf + act_tmp + tok_w + tok_h + ch_h + weights


def _pick_mixer_batch_tile(batch, sp, d, t, c, budget):
    """Largest divisor of batch that fits the VMEM budget (weight-reuse lever),
    while keeping >= 2 tiles on the 'parallel' axis for v7x's two TCs."""
    best = 1
    for bt in range(1, batch + 1):
        if batch % bt == 0 and _mixer_tile_bytes(bt, sp, d, t, c) <= budget:
            best = bt
    while best > 1 and batch // best < 2:
        best = max(dd for dd in range(1, best) if batch % dd == 0)
    return best


def _pick_head_batch_tile(batch, sp, d, budget):
    """Head block is [bt, Sp, D] f32, double-buffered -> size bt from VMEM."""
    per = 4 * sp * d * 4
    best = 1
    for bt in range(1, batch + 1):
        if batch % bt == 0 and bt * per <= budget and (bt % 8 == 0 or bt == batch):
            best = bt
    if best == 1:
        for bt in range(1, batch + 1):
            if batch % bt == 0 and bt * per <= budget:
                best = bt
    return best


# ----------------------------- kernels ------------------------------------- #

def patch_embed_kernel(x_ref, w_ref, b_ref, o_ref):
    # x: [tile_m, K] bf16, w: [K, D] bf16, b: [1, D] f32 -> o: [tile_m, D] f32
    o_ref[...] = (jnp.dot(x_ref[...], w_ref[...],
                          preferred_element_type=jnp.float32) + b_ref[...])


def mixer_blocks_kernel(
    x_hbm,                        # [B, Sp, D] f32 in HBM (ANY) - read at blk 0 only
    g1_ref, be1_ref,              # [1, 1, D] f32
    tw1_ref, tb1_ref,             # [1, T, Sp] bf16, [1, T, 1] f32   (fc1, PyTorch [out,in])
    tw2_ref, tb2_ref,             # [1, Sp, T] bf16, [1, Sp, 1] f32  (fc2)
    g2_ref, be2_ref,              # [1, 1, D] f32
    cw1_ref, cb1_ref,             # [1, D, C] bf16, [1, 1, C] f32
    cw2_ref, cb2_ref,             # [1, C, D] bf16, [1, 1, D] f32
    o_ref,                        # [Bt, Sp, D] f32, VMEM-resident across the block axis
    dma_sem,                      # DMA semaphore scratch
):
    bi = pl.program_id(0)
    blk = pl.program_id(1)
    bt, sp, d = o_ref.shape
    t_hid = tw1_ref.shape[1]

    # Initialize the resident activation by DMA-ing this batch tile straight
    # from HBM into the output buffer (no double-buffered VMEM x input).
    @pl.when(blk == 0)
    def _init():
        cp = pltpu.make_async_copy(x_hbm.at[pl.ds(bi * bt, bt)], o_ref, dma_sem)
        cp.start()
        cp.wait()

    x = o_ref[...]                                        # residual stream, f32

    # ---------------- token mixing: one batched MXU contraction ------------ #
    y = _layernorm(x, g1_ref[...], be1_ref[...], 1e-6)    # [Bt, Sp, D] f32
    y_bf = y.astype(jnp.bfloat16)
    tw1 = jnp.broadcast_to(tw1_ref[...], (bt, t_hid, sp))           # [Bt, T, Sp] bf16
    h = jnp.einsum("bts,bsd->btd", tw1, y_bf,
                   preferred_element_type=jnp.float32)              # [Bt, T, D] f32
    h = _gelu(h + tb1_ref[...])                                     # bias [1, T, 1]
    tw2 = jnp.broadcast_to(tw2_ref[...], (bt, sp, t_hid))           # [Bt, Sp, T] bf16
    tmix = jnp.einsum("bst,btd->bsd", tw2, h.astype(jnp.bfloat16),
                      preferred_element_type=jnp.float32)           # [Bt, Sp, D] f32
    x = x + tmix + tb2_ref[...]                                     # bias [1, Sp, 1]

    # ---------------- channel mixing: 2-D MXU matmuls on Bt*Sp rows -------- #
    z = _layernorm(x, g2_ref[...], be2_ref[...], 1e-6)
    z2 = z.reshape(bt * sp, d).astype(jnp.bfloat16)       # free relayout: sp % 8 == 0
    h2 = jnp.dot(z2, cw1_ref[0], preferred_element_type=jnp.float32) + cb1_ref[0]
    h2 = _gelu(h2)
    c = (jnp.dot(h2.astype(jnp.bfloat16), cw2_ref[0],
                 preferred_element_type=jnp.float32) + cb2_ref[0])
    o_ref[...] = x + c.reshape(bt, sp, d)                 # single store per grid step


def head_kernel(seq_len, x_ref, g_ref, b_ref, w_ref, bh_ref, o_ref):
    x = x_ref[...]                                        # [bt, Sp, D] f32
    xn = _layernorm(x, g_ref[...], b_ref[...], 1e-5)      # final LayerNorm (default eps)
    sp = x.shape[1]
    if sp == seq_len:
        pooled = jnp.mean(xn, axis=1)                     # [bt, D]
    else:
        # mask out the zero-padded sequence rows
        idx = lax.broadcasted_iota(jnp.int32, (1, sp, 1), 1)
        mask = (idx < seq_len).astype(xn.dtype)
        pooled = jnp.sum(xn * mask, axis=1) * (1.0 / seq_len)
    o_ref[...] = (jnp.dot(pooled.astype(jnp.bfloat16), w_ref[...],
                          preferred_element_type=jnp.float32) + bh_ref[...])


# ----------------------------- wrappers ------------------------------------ #

def patch_embed(images, w_bf16, b_f32, patch_size, embed_dim, seq_pad):
    """images [B, 3, H, W] -> tokens [B, seq_pad, embed_dim] (f32, pad rows benign)."""
    B, Cc, H, W = images.shape
    gh, gw = H // patch_size, W // patch_size
    S = gh * gw
    K = Cc * patch_size * patch_size
    imgs = images.astype(jnp.bfloat16)                    # cast BEFORE the transpose
    p = imgs.reshape(B, Cc, gh, patch_size, gw, patch_size)
    p = p.transpose(0, 2, 4, 1, 3, 5).reshape(B, S, K)    # matches Conv2d flattening
    if seq_pad > S:
        p = jnp.pad(p, ((0, 0), (0, seq_pad - S), (0, 0)))
    p = p.reshape(B * seq_pad, K)

    M = B * seq_pad
    tile_m = _largest_divisor(M, 1024)
    out = pl.pallas_call(
        patch_embed_kernel,
        out_shape=jax.ShapeDtypeStruct((M, embed_dim), jnp.float32),
        grid=(M // tile_m,),
        in_specs=[
            pl.BlockSpec((tile_m, K), lambda i: (i, 0)),
            pl.BlockSpec((K, embed_dim), lambda i: (0, 0)),
            pl.BlockSpec((1, embed_dim), lambda i: (0, 0)),
        ],
        out_specs=pl.BlockSpec((tile_m, embed_dim), lambda i: (i, 0)),
        compiler_params=pltpu.CompilerParams(dimension_semantics=("parallel",)),
    )(p, w_bf16, b_f32)
    return out.reshape(B, seq_pad, embed_dim)


def run_mixer_blocks(x, blocks, vmem_limit, budget):
    """All mixer blocks in ONE pallas_call; activation stays VMEM-resident
    across the (inner, 'arbitrary') block axis; input x stays in HBM."""
    B, Sp, D = x.shape
    L, T, S = blocks["tw1"].shape
    C = blocks["cw1"].shape[2]

    tw1, tw2, tb2 = blocks["tw1"], blocks["tw2"], blocks["tb2"]
    if Sp > S:                       # zero-pad token-mixing weights along the seq dim
        tw1 = jnp.pad(tw1, ((0, 0), (0, 0), (0, Sp - S)))
        tw2 = jnp.pad(tw2, ((0, 0), (0, Sp - S), (0, 0)))
        tb2 = jnp.pad(tb2, ((0, 0), (0, Sp - S), (0, 0)))

    Bt = _pick_mixer_batch_tile(B, Sp, D, T, C, budget)

    def wspec(shape):
        return pl.BlockSpec((1,) + shape, lambda bi, blk: (blk, 0, 0))

    in_specs = [
        pl.BlockSpec(memory_space=pl.ANY),                  # x in HBM, DMA'd at blk==0
        wspec((1, D)), wspec((1, D)),                       # norm1 gamma/beta
        wspec((T, Sp)), wspec((T, 1)),                      # token fc1 W, b
        wspec((Sp, T)), wspec((Sp, 1)),                     # token fc2 W, b
        wspec((1, D)), wspec((1, D)),                       # norm2 gamma/beta
        wspec((D, C)), wspec((1, C)),                       # channel fc1 W, b
        wspec((C, D)), wspec((1, D)),                       # channel fc2 W, b
    ]
    return pl.pallas_call(
        mixer_blocks_kernel,
        out_shape=jax.ShapeDtypeStruct((B, Sp, D), jnp.float32),
        grid=(B // Bt, L),
        in_specs=in_specs,
        out_specs=pl.BlockSpec((Bt, Sp, D), lambda bi, blk: (bi, 0, 0)),
        scratch_shapes=[pltpu.SemaphoreType.DMA(())],
        compiler_params=pltpu.CompilerParams(
            dimension_semantics=("parallel", "arbitrary"),
            vmem_limit_bytes=vmem_limit,
        ),
    )(
        x,
        blocks["g1"], blocks["be1"],
        tw1, blocks["tb1"], tw2, tb2,
        blocks["g2"], blocks["be2"],
        blocks["cw1"], blocks["cb1"], blocks["cw2"], blocks["cb2"],
    )


def run_head(x, g, b, w_bf16, bh, num_classes, seq_len, vmem_limit, budget):
    B, Sp, D = x.shape
    w_bytes = 2 * (D * num_classes * 2 + num_classes * 4 + 2 * D * 4)
    bt = _pick_head_batch_tile(B, Sp, D, max(budget - w_bytes, 1))
    return pl.pallas_call(
        functools.partial(head_kernel, seq_len),
        out_shape=jax.ShapeDtypeStruct((B, num_classes), jnp.float32),
        grid=(B // bt,),
        in_specs=[
            pl.BlockSpec((bt, Sp, D), lambda i: (i, 0, 0)),
            pl.BlockSpec((1, D), lambda i: (0, 0)),
            pl.BlockSpec((1, D), lambda i: (0, 0)),
            pl.BlockSpec((D, num_classes), lambda i: (0, 0)),
            pl.BlockSpec((1, num_classes), lambda i: (0, 0)),
        ],
        out_specs=pl.BlockSpec((bt, num_classes), lambda i: (i, 0)),
        compiler_params=pltpu.CompilerParams(
            dimension_semantics=("parallel",),
            vmem_limit_bytes=vmem_limit,
        ),
    )(x, g, b, w_bf16, bh)


def mlpmixer_forward(images, params, patch_size, embed_dim, num_classes):
    H, W = images.shape[2], images.shape[3]
    S = (H // patch_size) * (W // patch_size)
    Sp = _round_up(S, 8)
    vmem_limit, budget = _vmem_budget()

    x = patch_embed(images, params["proj_w"], params["proj_b"],
                    patch_size, embed_dim, Sp)
    x = run_mixer_blocks(x, params["blocks"], vmem_limit, budget)
    return run_head(x, params["norm_g"], params["norm_b"],
                    params["head_w"], params["head_b"],
                    num_classes, S, vmem_limit, budget // 2)


# -------------------------- parameter init --------------------------------- #

def _xavier(key, shape, fan_in, fan_out):
    limit = math.sqrt(6.0 / (fan_in + fan_out))
    return jax.random.uniform(key, shape, jnp.float32, -limit, limit)


def make_params(key, img_size, patch_size, embed_dim, num_blocks, num_classes):
    S = (img_size // patch_size) ** 2                 # num_patches (seq_len)
    D = embed_dim
    T = int(0.5 * D)                                  # tokens_dim
    C = int(4.0 * D)                                  # channels_dim
    K = 3 * patch_size * patch_size                   # conv fan-in
    L = num_blocks
    BF = jnp.bfloat16

    keys = jax.random.split(key, 4 + 8 * L)
    ki = iter(keys)

    # Conv2d kaiming_normal (fan_in, gain sqrt(2)), flattened to [K, D]
    std = math.sqrt(2.0 / K)
    conv_w = jax.random.normal(next(ki), (D, 3, patch_size, patch_size), jnp.float32) * std
    proj_w = conv_w.reshape(D, K).T.astype(BF)                 # [K, D] bf16
    proj_b = 0.05 * jax.random.normal(next(ki), (1, D), jnp.float32)

    tw1, tb1, tw2, tb2, cw1, cb1, cw2, cb2 = ([] for _ in range(8))
    for _ in range(L):
        tw1.append(_xavier(next(ki), (T, S), S, T))            # fc1 weight [out,in]
        tb1.append(0.05 * jax.random.normal(next(ki), (T, 1), jnp.float32))
        tw2.append(_xavier(next(ki), (S, T), T, S))            # fc2 weight [out,in]
        tb2.append(0.05 * jax.random.normal(next(ki), (S, 1), jnp.float32))
        cw1.append(_xavier(next(ki), (D, C), D, C))            # [in, out]
        cb1.append(0.05 * jax.random.normal(next(ki), (1, C), jnp.float32))
        cw2.append(_xavier(next(ki), (C, D), C, D))            # [in, out]
        cb2.append(0.05 * jax.random.normal(next(ki), (1, D), jnp.float32))

    blocks = dict(
        g1=jnp.ones((L, 1, D), jnp.float32), be1=jnp.zeros((L, 1, D), jnp.float32),
        tw1=jnp.stack(tw1).astype(BF), tb1=jnp.stack(tb1),
        tw2=jnp.stack(tw2).astype(BF), tb2=jnp.stack(tb2),
        g2=jnp.ones((L, 1, D), jnp.float32), be2=jnp.zeros((L, 1, D), jnp.float32),
        cw1=jnp.stack(cw1).astype(BF), cb1=jnp.stack(cb1),
        cw2=jnp.stack(cw2).astype(BF), cb2=jnp.stack(cb2),
    )

    head_w = _xavier(next(ki), (D, num_classes), D, num_classes).astype(BF)
    head_b = 0.05 * jax.random.normal(next(ki), (1, num_classes), jnp.float32)
    return dict(
        proj_w=proj_w, proj_b=proj_b,
        blocks=blocks,
        norm_g=jnp.ones((1, D), jnp.float32),
        norm_b=jnp.zeros((1, D), jnp.float32),
        head_w=head_w, head_b=head_b,
    )


# -------------------------- pure-JAX reference ------------------------------ #

def reference_forward(images, params, patch_size):
    BF = jnp.bfloat16

    def ln(v, g, b, eps):
        mu = v.mean(-1, keepdims=True)
        var = ((v - mu) ** 2).mean(-1, keepdims=True)
        return (v - mu) / jnp.sqrt(var + eps) * g + b

    gelu = lambda v: 0.5 * v * (1.0 + lax.erf(v / math.sqrt(2.0)))

    B, Cc, H, W = images.shape
    gh, gw = H // patch_size, W // patch_size
    p = images.reshape(B, Cc, gh, patch_size, gw, patch_size)
    p = p.transpose(0, 2, 4, 1, 3, 5).reshape(B, gh * gw, Cc * patch_size * patch_size)
    x = jnp.dot(p.astype(BF), params["proj_w"],
                preferred_element_type=jnp.float32) + params["proj_b"]

    bl = params["blocks"]
    for l in range(bl["tw1"].shape[0]):
        y = ln(x, bl["g1"][l], bl["be1"][l], 1e-6)
        h = jnp.einsum("ts,bsd->btd", bl["tw1"][l], y.astype(BF),
                       preferred_element_type=jnp.float32)
        h = gelu(h + bl["tb1"][l].reshape(1, -1, 1))
        t = jnp.einsum("st,btd->bsd", bl["tw2"][l], h.astype(BF),
                       preferred_element_type=jnp.float32)
        x = x + t + bl["tb2"][l].reshape(1, -1, 1)

        z = ln(x, bl["g2"][l], bl["be2"][l], 1e-6)
        h2 = gelu(jnp.dot(z.astype(BF), bl["cw1"][l],
                          preferred_element_type=jnp.float32) + bl["cb1"][l])
        x = x + jnp.dot(h2.astype(BF), bl["cw2"][l],
                        preferred_element_type=jnp.float32) + bl["cb2"][l]

    x = ln(x, params["norm_g"], params["norm_b"], 1e-5)
    pooled = x.mean(axis=1)
    return jnp.dot(pooled.astype(BF), params["head_w"],
                   preferred_element_type=jnp.float32) + params["head_b"]


# ------------------------------- main --------------------------------------- #

if __name__ == "__main__":
    # small config: 16x16 images, patch 4 -> 16 tokens, embed_dim 32, 2 blocks
    IMG, PATCH, DIM, NBLK, NCLS, BATCH = 16, 4, 32, 2, 10, 2

    key = jax.random.PRNGKey(0)
    k_img, k_par = jax.random.split(key)
    images = jax.random.normal(k_img, (BATCH, 3, IMG, IMG), jnp.float32)
    params = make_params(k_par, IMG, PATCH, DIM, NBLK, NCLS)

    out = mlpmixer_forward(images, params, PATCH, DIM, NCLS)
    out = jax.block_until_ready(out)

    ref = reference_forward(images, params, PATCH)
    assert out.shape == (BATCH, NCLS)
    err = jnp.max(jnp.abs(out - ref))
    assert jnp.allclose(out, ref, atol=2e-2, rtol=2e-2), f"max abs err {err}"

    # TODO(synk): nn.Dropout (drop_rate=0.0) is identity at inference and is omitted.
    print("KERNEL_OK")
</pallas_src>

<mosaic_0001>
module attributes {stable_mosaic.version = 11 : i64} {
  func.func @patch_embed_kernel(%arg0: i32, %arg1: memref<32x48xbf16, #tpu.memory_space<vmem>>, %arg2: memref<48x32xbf16, #tpu.memory_space<vmem>>, %arg3: memref<1x32xf32, #tpu.memory_space<vmem>>, %arg4: memref<32x32xf32, #tpu.memory_space<vmem>>) attributes {dimension_semantics = [#tpu.dimension_semantics<parallel>], iteration_bounds = array<i64: 1>, scalar_prefetch = 0 : i64, scratch_operands = 0 : i64, tpu.core_type = #tpu.core_type<tc>, window_params = [{transform_indices = @transform_0, window_bounds = array<i64: 32, 48>}, {pipeline_mode = #tpu.pipeline_mode<synchronous>, transform_indices = @transform_1, window_bounds = array<i64: 48, 32>}, {pipeline_mode = #tpu.pipeline_mode<synchronous>, transform_indices = @transform_2, window_bounds = array<i64: 1, 32>}, {transform_indices = @transform_3, window_bounds = array<i64: 32, 32>}]} {
    %c0 = arith.constant 0 : index
    %c0_0 = arith.constant 0 : index
    %0 = vector.load %arg1[%c0, %c0_0] : memref<32x48xbf16, #tpu.memory_space<vmem>>, vector<32x48xbf16>
    %c0_1 = arith.constant 0 : index
    %c0_2 = arith.constant 0 : index
    %1 = vector.load %arg2[%c0_1, %c0_2] : memref<48x32xbf16, #tpu.memory_space<vmem>>, vector<48x32xbf16>
    %cst = arith.constant dense<0.000000e+00> : vector<32x32xf32>
    %2 = tpu.matmul %0, %1, %cst {dimension_numbers = #tpu.dot_dimension_numbers<[1], [0], [0], [1], [0, 0, 1, 1], [], []>} : vector<32x48xbf16>, vector<48x32xbf16>, vector<32x32xf32> -> vector<32x32xf32>
    %c0_3 = arith.constant 0 : index
    %c0_4 = arith.constant 0 : index
    %3 = vector.load %arg3[%c0_3, %c0_4] : memref<1x32xf32, #tpu.memory_space<vmem>>, vector<1x32xf32>
    %4 = vector.broadcast %3 : vector<1x32xf32> to vector<32x32xf32>
    %5 = arith.addf %2, %4 : vector<32x32xf32>
    %c0_5 = arith.constant 0 : index
    %c0_6 = arith.constant 0 : index
    %6 = vector.load %arg4[%c0_5, %c0_6] : memref<32x32xf32, #tpu.memory_space<vmem>>, vector<32x32xf32>
    tpu.vector_store %arg4[%c0_5, %c0_6], %5 {strides = array<i32>} : memref<32x32xf32, #tpu.memory_space<vmem>>, vector<32x32xf32>,
    return
  }
  func.func @transform_0(%arg0: i32) -> (i32, i32) {
    %c0_i32 = arith.constant 0 : i32
    %c0_i32_0 = arith.constant 0 : i32
    return %arg0, %c0_i32 : i32, i32
  }
  func.func @transform_1(%arg0: i32) -> (i32, i32) {
    %c0_i32 = arith.constant 0 : i32
    %c0_i32_0 = arith.constant 0 : i32
    %c0_i32_1 = arith.constant 0 : i32
    return %c0_i32, %c0_i32_0 : i32, i32
  }
  func.func @transform_2(%arg0: i32) -> (i32, i32) {
    %c0_i32 = arith.constant 0 : i32
    %c0_i32_0 = arith.constant 0 : i32
    %c0_i32_1 = arith.constant 0 : i32
    return %c0_i32, %c0_i32_0 : i32, i32
  }
  func.func @transform_3(%arg0: i32) -> (i32, i32) {
    %c0_i32 = arith.constant 0 : i32
    %c0_i32_0 = arith.constant 0 : i32
    return %arg0, %c0_i32 : i32, i32
  }
}

</mosaic_0001>

<bundles_post_ra>
// kernel: tpu_custom_call.1
= control target key start
LH: loop header
LB: loop body
LE: loop exit
PB: predicated region body
PF: predicated region fallthrough
CT: control target
= control target key end

     0   :  { %vm61_vm0 = vcmask 392192   ;;  %s246_s0 = inlined_call_operand.vmem [shape: bf16[32,48], index: 0, kind: input, shape index: {}]   ;;  %s247_s1 = inlined_call_operand.vmem [shape: bf16[48,32], index: 1, kind: input, shape index: {}]   ;;  %s248_s2 = inlined_call_operand.vmem [shape: f32[1,32], index: 2, kind: input, shape index: {}]   ;;  %s249_s3 = inlined_call_operand.hbm [shape: f32[32,32], index: 3, kind: output, shape index: {}]  }
   0x1   :  { %v164_v0 = vld [vmem:[%s247_s1] sm:$0xff]   ;;  %v165_v1 = vld [vmem:[%s247_s1 + $0x8] sm:$0xff]   ;;  %v166_v3 = vld [vmem:[%s247_s1 + $0x10] sm:$0xff]  }
   0x2   :  { %151 = vmatprep.subr.bf16.mxu0 %v164_v0  ;;  %v167_v2 = vld [vmem:[%s246_s0] sm:$0xff]  }
   0x3   :  { %152 = vmatpush3.bf16.msra.mxu0 %v164_v0  ;;  %157 = vmatprep.mubr.msk.bf16.mxu0 %vm61_vm0, %v167_v2 }
   0x4   :  { %153 = vmatprep.subr.bf16.mxu0 %v165_v1 }
   0x5   :  { %8 = vsyncpa [#allocation3], 0  ;;  %v168_v4 = vld [vmem:[%s246_s0 + $0x8] sm:$0xff]   ;;  %v138_v5 = vld [vmem:[%s248_s2] ss:$0 sm:$0xff]  ;;  %vm117_vm1 = vcmask 261120  }
   0x6   :  { %s193_s24 = smov [#allocation2]  }
   0x7   :  { %154 = vmatpush3.bf16.msra.mxu0 %v165_v1  ;;  %s127_s25 = sshll.u32 %s193_s24, 4  ;;  %s128_s25 = int_to_ptr.vmem [resolvable:$true] %s127_s25 }
   0x8   :  { %155 = vmatprep.subr.bf16.mxu0 %v166_v3  ;;  %s169_s0 = scalar_lea.vmem %s128_s25, 512  ;;  %p174_p1 = scmp.lt.s32.totalorder %s128_s25, %s128_s25 }
   0x9   :  { %p170_p0 = scmp.ne.s32.totalorder %s128_s25, %s169_s0  ;;  %p175_p2 = scmp.lt.s32.totalorder %s169_s0, %s169_s0 }
   0xb   :  { %156 = vmatpush3.bf16.msra.mxu0 %v166_v3  ;;  %p176_p3 = por %p175_p2, %p174_p1 }
   0xd   :  { %p177_p4 = pnand %p176_p3, %p170_p0 }
   0xe   :  { %158 = vmatmul.mubr.msk.bf16.vlgmr.msra.gmra.mrb[0].mxu0 %vm61_vm0, %v168_v4 }
  0xe1   :  { %v159_v6 = vpop.f32.mrb[0].mxu0 }
  0xe2   :  { %v111_v7 = vadd.f32 %v159_v6, %v138_v5  ;;  %v102_v8 = vpop.f32.mrb[1].mxu0 }
  0xe3   :  { %v103_v9 = vadd.f32 %v138_v5, %v102_v8  ;;  %v160_v10 = vpop.f32.mrb[2].mxu0 }
  0xe4   :  { %120 = vst.msk [vmem:[#allocation2 + $0x10] sm:$0xff] %vm117_vm1, %v111_v7  ;;  %v114_v11 = vadd.f32 %v160_v10, %v138_v5  ;;  %v105_v12 = vpop.f32.mrb[3].mxu0 }
  0xe5   :  { %118 = vst.msk [vmem:[#allocation2] sm:$0xff] %vm117_vm1, %v103_v9  ;;  %v106_v13 = vadd.f32 %v138_v5, %v105_v12 }
  0xe6   :  { %121 = vst.msk [vmem:[#allocation2 + $0x18] sm:$0xff] %vm117_vm1, %v114_v11 }
  0xe7   :  { %119 = vst.msk [vmem:[#allocation2 + $0x8] sm:$0xff] %vm117_vm1, %v106_v13 }
  0xe8   :  { %180 = shalt.err (!%p177_p4)
}
  0xe9   :  { %s181_s26 = scalar_lea.hbm %s249_s3, 512 }
  0xea   :  { %p182_p5 = scmp.ne.s32.totalorder %s249_s3, %s181_s26  ;;  %p185_p6 = scmp.lt.u32.totalorder %s181_s26, %s249_s3 }
  0xec   :  { %p187_p7 = pnand %p185_p6, %p182_p5 }
  0xee   :  { %190 = shalt.err (!%p187_p7)
}
  0xef   :  { %s194_s4 = smov 128   ;;  %s195_s5 = smov 8  }
  0xf0   :  { %133 = dma.vmem_to_hbm [thread:$0]  %s128_s25, 512, %s249_s3, [#allocation3], %s194_s4, %s194_s4, %s195_s5  }
  0xf1   :  { %191 = dma.done.wait [#allocation3], 512  }
  0xf2   :  { %192 = vsyncadd [#allocation3], 4294966784 }
  0xf3   :  { %137 = vsyncpa [#allocation3], 1 }

</bundles_post_ra>
